<compile_context>
chip_gen: v7x
topology: tpu7x:2x2x1
jax: 0.10.0
libtpu: 0.0.40
codegen_flags: <defaults>
</compile_context>

<pallas_src>
import math
from functools import partial

import numpy as np
import jax
import jax.numpy as jnp
from jax.experimental import pallas as pl
from jax.experimental.pallas import tpu as pltpu

N_QUBITS = 4
DEPTH = 4
DIM = 2 ** N_QUBITS
_HALF_PI = math.pi / 2.0

MAX_TILE_BIG_VMEM = 65536    # v5e / v6e (128 MiB physical VMEM)
MAX_TILE_SMALL_VMEM = 32768  # v7x (64 MiB VMEM per TensorCore)


# ----------------------------------------------------------------------------
# Pallas kernel: RX-embedding magnitudes + quadratic form mag^T M mag
# ----------------------------------------------------------------------------
def _qgan_generator_kernel(x_ref, m_ref, o_ref):
    x = x_ref[...]                                   # [NQ, TB] angles, batch on lanes
    half = 0.5 * x                                   # [NQ, TB]

    # Sublane-dense angle block: row w -> x_w/2 (cos), row NQ+w -> x_w/2 - pi/2
    # (sin), so ONE trig pass over full [8, TB] vregs yields both cos and sin.
    r8 = jax.lax.broadcasted_iota(jnp.int32, (2 * N_QUBITS, 1), 0)      # [8, 1]
    wire = r8 & (N_QUBITS - 1)                                          # 0,1,2,3,0,1,2,3
    h8 = None
    for w in range(N_QUBITS):                        # static unroll (4 wires)
        sel = (wire == w).astype(jnp.float32)        # [8, 1]
        term = sel * half[w:w + 1, :]                # broadcast [8,1]*[1,TB]
        h8 = term if h8 is None else h8 + term
    h8 = h8 - _HALF_PI * (r8 >= N_QUBITS).astype(jnp.float32)
    trig = jnp.cos(h8)                               # rows 0-3: cos(x/2), 4-7: sin(x/2)

    # |psi0[k, b]| = prod_w (cos(x_w/2) if bit_w(k)==0 else sin(x_w/2))
    k_idx = jax.lax.broadcasted_iota(jnp.int32, (DIM, 1), 0)            # [16, 1]
    mag = None
    for w in range(N_QUBITS):
        bit_w = ((k_idx >> (N_QUBITS - 1 - w)) & 1).astype(jnp.float32)  # [16, 1]
        cw = trig[w:w + 1, :]                        # [1, TB]
        sw = trig[N_QUBITS + w:N_QUBITS + w + 1, :]  # [1, TB]
        factor = cw + bit_w * (sw - cw)              # [16, TB]
        mag = factor if mag is None else mag * factor

    # Single tiny MXU matmul (f32 accumulate), then VPU reduce over sublanes:
    #   <Z0>_b = sum_{k,l} mag[k,b] * M[k,l] * mag[l,b]
    v = jnp.dot(m_ref[...], mag, preferred_element_type=jnp.float32)    # [16, TB]
    expval = jnp.sum(mag * v, axis=0, keepdims=True)                    # [1, TB] lane-dense
    o_ref[...] = expval.astype(o_ref.dtype)


# ----------------------------------------------------------------------------
# Host-side (numpy) precompute: weight-only unitary + folded observable matrix
# ----------------------------------------------------------------------------
def _ry(theta):
    c, s = math.cos(theta / 2.0), math.sin(theta / 2.0)
    return np.array([[c, -s], [s, c]], dtype=np.float64)


def build_circuit_unitary(q_weights):
    """Real 16x16 unitary for `depth` layers of (RY on every wire, CZ chain).
    Wire 0 is the most-significant bit (PennyLane default.qubit convention)."""
    w = np.asarray(q_weights, dtype=np.float64).reshape(DEPTH, N_QUBITS)
    cz_diag = np.ones(DIM, dtype=np.float64)
    for k in range(DIM):
        for y in range(N_QUBITS - 1):
            b0 = (k >> (N_QUBITS - 1 - y)) & 1
            b1 = (k >> (N_QUBITS - 2 - y)) & 1
            if b0 and b1:
                cz_diag[k] *= -1.0
    u = np.eye(DIM, dtype=np.float64)
    for i in range(DEPTH):
        layer = np.array([[1.0]], dtype=np.float64)
        for y in range(N_QUBITS):          # wire 0 = leftmost kron factor (MSB)
            layer = np.kron(layer, _ry(w[i, y]))
        u = (cz_diag[:, None] * layer) @ u
    return u


def build_effective_matrix(q_weights):
    """M[k,l] = (U^T Z0 U)[k,l] * Re[conj((-i)^p_k) (-i)^p_l]  so that
    <Z0>_b = mag_b^T M mag_b  for the real embedding magnitudes mag_b."""
    u = build_circuit_unitary(q_weights)                        # [16,16] real
    popcnt = np.array([bin(k).count("1") for k in range(DIM)], dtype=np.int64)
    bit0 = np.array([(k >> (N_QUBITS - 1)) & 1 for k in range(DIM)], dtype=np.float64)
    z0 = 1.0 - 2.0 * bit0                                       # PauliZ(0) eigenvalues
    a = u.T @ (z0[:, None] * u)                                 # U^T diag(Z0) U, symmetric
    coh = np.round(np.cos((popcnt[None, :] - popcnt[:, None]) * (np.pi / 2.0)))
    return (a * coh).astype(np.float32)


# ----------------------------------------------------------------------------
# Wrapper: chip-aware tiling + lane-dense layout plumbing
# ----------------------------------------------------------------------------
def _round_up(x, m):
    return ((x + m - 1) // m) * m


def _chip_tile_params():
    """(max_tile, vmem_limit_bytes) sized to the local chip's VMEM capacity."""
    try:
        vmem = int(pltpu.get_tpu_info().vmem_capacity_bytes)
    except Exception:
        vmem = 64 * 1024 * 1024                      # conservative (v7x-sized)
    if vmem >= 100 * 1024 * 1024:                    # v5e / v6e: 128 MiB physical
        return MAX_TILE_BIG_VMEM, 96 * 1024 * 1024
    return MAX_TILE_SMALL_VMEM, 48 * 1024 * 1024     # v7x: 64 MiB per TC


def _choose_tile(batch, max_tile):
    """Lane-aligned batch tile; >=2 grid steps when possible (v7x megacore)."""
    half = -(-batch // 2)
    tile = max(128, _round_up(half, 128))
    return min(max_tile, tile)


@partial(jax.jit, static_argnames=("tile", "vmem_limit_bytes"))
def _qgan_forward_impl(noise, m_eff, *, tile, vmem_limit_bytes):
    b = noise.shape[0]
    b_pad = _round_up(max(b, 128), 128)              # lane-dense blocks, no masked vst

    # Layout plumbing (fused by XLA, optionally into the pallas call itself
    # via allow_input_fusion): batch on the lane axis, zero-pad the lanes.
    noise_t = jnp.transpose(noise.astype(jnp.float32))           # [NQ, B]
    if b_pad != b:
        noise_t = jnp.pad(noise_t, ((0, 0), (0, b_pad - b)))

    grid = (pl.cdiv(b_pad, tile),)
    out = pl.pallas_call(
        _qgan_generator_kernel,
        out_shape=jax.ShapeDtypeStruct((1, b_pad), jnp.float32),
        grid=grid,
        in_specs=[
            pl.BlockSpec((N_QUBITS, tile), lambda i: (0, i)),    # noise tile
            pl.BlockSpec((DIM, DIM), lambda i: (0, 0)),          # constant M (1 KiB)
        ],
        out_specs=pl.BlockSpec((1, tile), lambda i: (0, i)),
        compiler_params=pltpu.CompilerParams(
            dimension_semantics=("parallel",),                   # megacore sharding (v7x)
            allow_input_fusion=[True, False],                    # fold pad/transpose in
            vmem_limit_bytes=vmem_limit_bytes,
        ),
    )(noise_t, m_eff)
    return out[0, :b]                                            # [B], like torch forward


def qgan_generator_forward(noise, m_eff):
    """noise: [B, N_QUBITS] ; m_eff: [DIM, DIM] f32 ; returns [B] f32 (<Z0>)."""
    max_tile, vmem_limit = _chip_tile_params()
    tile = _choose_tile(noise.shape[0], max_tile)
    return _qgan_forward_impl(noise, m_eff, tile=tile, vmem_limit_bytes=vmem_limit)


if __name__ == "__main__":
    key = jax.random.PRNGKey(0)
    k_noise, k_w = jax.random.split(key)

    batch = 8
    noise = jax.random.uniform(k_noise, (batch, N_QUBITS), jnp.float32,
                               minval=0.0, maxval=math.pi)
    # Deterministic trainable weights (shape depth * n_qubits, as in __init__).
    q_weights = np.asarray(jax.random.uniform(
        k_w, (DEPTH * N_QUBITS,), jnp.float32, minval=0.0, maxval=2.0 * math.pi))

    m_eff = jnp.asarray(build_effective_matrix(q_weights))

    out = qgan_generator_forward(noise, m_eff)
    out = jax.block_until_ready(out)

    # Pure numpy float64 reference via the full complex statevector
    # (independent of the host-side observable fold).
    u = build_circuit_unitary(q_weights)
    xn = np.asarray(noise, np.float64)
    c, s = np.cos(xn / 2.0), np.sin(xn / 2.0)
    bits = np.zeros((N_QUBITS, DIM), dtype=np.float64)
    popcnt = np.zeros(DIM, dtype=np.int64)
    for k in range(DIM):
        for w in range(N_QUBITS):
            bb = (k >> (N_QUBITS - 1 - w)) & 1
            bits[w, k] = bb
            popcnt[k] += bb
    mag = np.ones((batch, DIM), dtype=np.float64)
    for w in range(N_QUBITS):
        mag *= c[:, w:w + 1] + bits[w:w + 1, :] * (s[:, w:w + 1] - c[:, w:w + 1])
    psi0 = mag * ((-1j) ** popcnt)[None, :]
    psi = psi0 @ u.T
    z0 = 1.0 - 2.0 * bits[0, :]
    ref = ((np.abs(psi) ** 2) * z0[None, :]).sum(-1)

    assert out.shape == (batch,)
    np.testing.assert_allclose(np.asarray(out, np.float64), ref, atol=2e-2, rtol=2e-2)
    print("KERNEL_OK")
</pallas_src>

<mosaic_0001>
module attributes {stable_mosaic.version = 11 : i64} {
  func.func @_qgan_generator_kernel(%arg0: i32, %arg1: memref<4x128xf32, #tpu.memory_space<vmem>>, %arg2: memref<16x16xf32, #tpu.memory_space<vmem>>, %arg3: memref<1x128xf32, #tpu.memory_space<vmem>>) attributes {dimension_semantics = [#tpu.dimension_semantics<parallel>], iteration_bounds = array<i64: 1>, scalar_prefetch = 0 : i64, scratch_operands = 0 : i64, tpu.core_type = #tpu.core_type<tc>, window_params = [{transform_indices = @transform_0, window_bounds = array<i64: 4, 128>}, {pipeline_mode = #tpu.pipeline_mode<synchronous>, transform_indices = @transform_1, window_bounds = array<i64: 16, 16>}, {transform_indices = @transform_2, window_bounds = array<i64: 1, 128>}]} {
    %c0 = arith.constant 0 : index
    %c0_0 = arith.constant 0 : index
    %0 = vector.load %arg1[%c0, %c0_0] : memref<4x128xf32, #tpu.memory_space<vmem>>, vector<4x128xf32>
    %cst = arith.constant 5.000000e-01 : f32
    %1 = vector.broadcast %cst : f32 to vector<4x128xf32>
    %2 = arith.mulf %1, %0 : vector<4x128xf32>
    %3 = tpu.iota {dimensions = array<i32: 0>} : vector<8x1xi32>
    %c3_i32 = arith.constant 3 : i32
    %4 = vector.broadcast %c3_i32 : i32 to vector<8x1xi32>
    %5 = arith.andi %3, %4 : vector<8x1xi32>
    %c0_i32 = arith.constant 0 : i32
    %6 = vector.broadcast %c0_i32 : i32 to vector<8x1xi32>
    %7 = arith.cmpi eq, %5, %6 : vector<8x1xi32>
    %8 = arith.extui %7 : vector<8x1xi1> to vector<8x1xi32>
    %9 = arith.sitofp %8 : vector<8x1xi32> to vector<8x1xf32>
    %10 = vector.extract_strided_slice %2 {offsets = [0, 0], sizes = [1, 128], strides = [1, 1]} : vector<4x128xf32> to vector<1x128xf32>
    %11 = vector.broadcast %9 : vector<8x1xf32> to vector<8x128xf32>
    %12 = vector.broadcast %10 : vector<1x128xf32> to vector<8x128xf32>
    %13 = arith.mulf %11, %12 : vector<8x128xf32>
    %c1_i32 = arith.constant 1 : i32
    %14 = vector.broadcast %c1_i32 : i32 to vector<8x1xi32>
    %15 = arith.cmpi eq, %5, %14 : vector<8x1xi32>
    %16 = arith.extui %15 : vector<8x1xi1> to vector<8x1xi32>
    %17 = arith.sitofp %16 : vector<8x1xi32> to vector<8x1xf32>
    %18 = vector.extract_strided_slice %2 {offsets = [1, 0], sizes = [1, 128], strides = [1, 1]} : vector<4x128xf32> to vector<1x128xf32>
    %19 = vector.broadcast %17 : vector<8x1xf32> to vector<8x128xf32>
    %20 = vector.broadcast %18 : vector<1x128xf32> to vector<8x128xf32>
    %21 = arith.mulf %19, %20 : vector<8x128xf32>
    %22 = arith.addf %13, %21 : vector<8x128xf32>
    %c2_i32 = arith.constant 2 : i32
    %23 = vector.broadcast %c2_i32 : i32 to vector<8x1xi32>
    %24 = arith.cmpi eq, %5, %23 : vector<8x1xi32>
    %25 = arith.extui %24 : vector<8x1xi1> to vector<8x1xi32>
    %26 = arith.sitofp %25 : vector<8x1xi32> to vector<8x1xf32>
    %27 = vector.extract_strided_slice %2 {offsets = [2, 0], sizes = [1, 128], strides = [1, 1]} : vector<4x128xf32> to vector<1x128xf32>
    %28 = vector.broadcast %26 : vector<8x1xf32> to vector<8x128xf32>
    %29 = vector.broadcast %27 : vector<1x128xf32> to vector<8x128xf32>
    %30 = arith.mulf %28, %29 : vector<8x128xf32>
    %31 = arith.addf %22, %30 : vector<8x128xf32>
    %c3_i32_1 = arith.constant 3 : i32
    %32 = vector.broadcast %c3_i32_1 : i32 to vector<8x1xi32>
    %33 = arith.cmpi eq, %5, %32 : vector<8x1xi32>
    %34 = arith.extui %33 : vector<8x1xi1> to vector<8x1xi32>
    %35 = arith.sitofp %34 : vector<8x1xi32> to vector<8x1xf32>
    %36 = vector.extract_strided_slice %2 {offsets = [3, 0], sizes = [1, 128], strides = [1, 1]} : vector<4x128xf32> to vector<1x128xf32>
    %37 = vector.broadcast %35 : vector<8x1xf32> to vector<8x128xf32>
    %38 = vector.broadcast %36 : vector<1x128xf32> to vector<8x128xf32>
    %39 = arith.mulf %37, %38 : vector<8x128xf32>
    %40 = arith.addf %31, %39 : vector<8x128xf32>
    %c4_i32 = arith.constant 4 : i32
    %41 = vector.broadcast %c4_i32 : i32 to vector<8x1xi32>
    %42 = arith.cmpi sge, %3, %41 : vector<8x1xi32>
    %43 = arith.extui %42 : vector<8x1xi1> to vector<8x1xi32>
    %44 = arith.sitofp %43 : vector<8x1xi32> to vector<8x1xf32>
    %cst_2 = arith.constant 1.57079637 : f32
    %45 = vector.broadcast %cst_2 : f32 to vector<8x1xf32>
    %46 = arith.mulf %45, %44 : vector<8x1xf32>
    %47 = vector.broadcast %46 : vector<8x1xf32> to vector<8x128xf32>
    %48 = arith.subf %40, %47 : vector<8x128xf32>
    %49 = math.cos %48 : vector<8x128xf32>
    %50 = tpu.iota {dimensions = array<i32: 0>} : vector<16x1xi32>
    %c3_i32_3 = arith.constant 3 : i32
    %51 = vector.broadcast %c3_i32_3 : i32 to vector<16x1xi32>
    %52 = arith.shrsi %50, %51 : vector<16x1xi32>
    %c1_i32_4 = arith.constant 1 : i32
    %53 = vector.broadcast %c1_i32_4 : i32 to vector<16x1xi32>
    %54 = arith.andi %52, %53 : vector<16x1xi32>
    %55 = arith.sitofp %54 : vector<16x1xi32> to vector<16x1xf32>
    %56 = vector.extract_strided_slice %49 {offsets = [0, 0], sizes = [1, 128], strides = [1, 1]} : vector<8x128xf32> to vector<1x128xf32>
    %57 = vector.extract_strided_slice %49 {offsets = [4, 0], sizes = [1, 128], strides = [1, 1]} : vector<8x128xf32> to vector<1x128xf32>
    %58 = arith.subf %57, %56 : vector<1x128xf32>
    %59 = vector.broadcast %55 : vector<16x1xf32> to vector<16x128xf32>
    %60 = vector.broadcast %58 : vector<1x128xf32> to vector<16x128xf32>
    %61 = arith.mulf %59, %60 : vector<16x128xf32>
    %62 = vector.broadcast %56 : vector<1x128xf32> to vector<16x128xf32>
    %63 = arith.addf %62, %61 : vector<16x128xf32>
    %c2_i32_5 = arith.constant 2 : i32
    %64 = vector.broadcast %c2_i32_5 : i32 to vector<16x1xi32>
    %65 = arith.shrsi %50, %64 : vector<16x1xi32>
    %c1_i32_6 = arith.constant 1 : i32
    %66 = vector.broadcast %c1_i32_6 : i32 to vector<16x1xi32>
    %67 = arith.andi %65, %66 : vector<16x1xi32>
    %68 = arith.sitofp %67 : vector<16x1xi32> to vector<16x1xf32>
    %69 = vector.extract_strided_slice %49 {offsets = [1, 0], sizes = [1, 128], strides = [1, 1]} : vector<8x128xf32> to vector<1x128xf32>
    %70 = vector.extract_strided_slice %49 {offsets = [5, 0], sizes = [1, 128], strides = [1, 1]} : vector<8x128xf32> to vector<1x128xf32>
    %71 = arith.subf %70, %69 : vector<1x128xf32>
    %72 = vector.broadcast %68 : vector<16x1xf32> to vector<16x128xf32>
    %73 = vector.broadcast %71 : vector<1x128xf32> to vector<16x128xf32>
    %74 = arith.mulf %72, %73 : vector<16x128xf32>
    %75 = vector.broadcast %69 : vector<1x128xf32> to vector<16x128xf32>
    %76 = arith.addf %75, %74 : vector<16x128xf32>
    %77 = arith.mulf %63, %76 : vector<16x128xf32>
    %c1_i32_7 = arith.constant 1 : i32
    %78 = vector.broadcast %c1_i32_7 : i32 to vector<16x1xi32>
    %79 = arith.shrsi %50, %78 : vector<16x1xi32>
    %c1_i32_8 = arith.constant 1 : i32
    %80 = vector.broadcast %c1_i32_8 : i32 to vector<16x1xi32>
    %81 = arith.andi %79, %80 : vector<16x1xi32>
    %82 = arith.sitofp %81 : vector<16x1xi32> to vector<16x1xf32>
    %83 = vector.extract_strided_slice %49 {offsets = [2, 0], sizes = [1, 128], strides = [1, 1]} : vector<8x128xf32> to vector<1x128xf32>
    %84 = vector.extract_strided_slice %49 {offsets = [6, 0], sizes = [1, 128], strides = [1, 1]} : vector<8x128xf32> to vector<1x128xf32>
    %85 = arith.subf %84, %83 : vector<1x128xf32>
    %86 = vector.broadcast %82 : vector<16x1xf32> to vector<16x128xf32>
    %87 = vector.broadcast %85 : vector<1x128xf32> to vector<16x128xf32>
    %88 = arith.mulf %86, %87 : vector<16x128xf32>
    %89 = vector.broadcast %83 : vector<1x128xf32> to vector<16x128xf32>
    %90 = arith.addf %89, %88 : vector<16x128xf32>
    %91 = arith.mulf %77, %90 : vector<16x128xf32>
    %c0_i32_9 = arith.constant 0 : i32
    %92 = vector.broadcast %c0_i32_9 : i32 to vector<16x1xi32>
    %93 = arith.shrsi %50, %92 : vector<16x1xi32>
    %c1_i32_10 = arith.constant 1 : i32
    %94 = vector.broadcast %c1_i32_10 : i32 to vector<16x1xi32>
    %95 = arith.andi %93, %94 : vector<16x1xi32>
    %96 = arith.sitofp %95 : vector<16x1xi32> to vector<16x1xf32>
    %97 = vector.extract_strided_slice %49 {offsets = [3, 0], sizes = [1, 128], strides = [1, 1]} : vector<8x128xf32> to vector<1x128xf32>
    %98 = vector.extract_strided_slice %49 {offsets = [7, 0], sizes = [1, 128], strides = [1, 1]} : vector<8x128xf32> to vector<1x128xf32>
    %99 = arith.subf %98, %97 : vector<1x128xf32>
    %100 = vector.broadcast %96 : vector<16x1xf32> to vector<16x128xf32>
    %101 = vector.broadcast %99 : vector<1x128xf32> to vector<16x128xf32>
    %102 = arith.mulf %100, %101 : vector<16x128xf32>
    %103 = vector.broadcast %97 : vector<1x128xf32> to vector<16x128xf32>
    %104 = arith.addf %103, %102 : vector<16x128xf32>
    %105 = arith.mulf %91, %104 : vector<16x128xf32>
    %c0_11 = arith.constant 0 : index
    %c0_12 = arith.constant 0 : index
    %106 = vector.load %arg2[%c0_11, %c0_12] : memref<16x16xf32, #tpu.memory_space<vmem>>, vector<16x16xf32>
    %cst_13 = arith.constant dense<0.000000e+00> : vector<16x128xf32>
    %107 = tpu.matmul %106, %105, %cst_13 {dimension_numbers = #tpu.dot_dimension_numbers<[1], [0], [0], [1], [0, 0, 1, 1], [], []>} : vector<16x16xf32>, vector<16x128xf32>, vector<16x128xf32> -> vector<16x128xf32>
    %108 = arith.mulf %105, %107 : vector<16x128xf32>
    %cst_14 = arith.constant dense<0.000000e+00> : vector<128xf32>
    %109 = vector.multi_reduction <add>, %108, %cst_14 [0] : vector<16x128xf32> to vector<128xf32>
    %110 = vector.shape_cast %109 : vector<128xf32> to vector<1x128xf32>
    %c0_15 = arith.constant 0 : index
    %c0_16 = arith.constant 0 : index
    %111 = vector.load %arg3[%c0_15, %c0_16] : memref<1x128xf32, #tpu.memory_space<vmem>>, vector<1x128xf32>
    tpu.vector_store %arg3[%c0_15, %c0_16], %110 {strides = array<i32>} : memref<1x128xf32, #tpu.memory_space<vmem>>, vector<1x128xf32>,
    return
  }
  func.func @transform_0(%arg0: i32) -> (i32, i32) {
    %c0_i32 = arith.constant 0 : i32
    %c0_i32_0 = arith.constant 0 : i32
    return %c0_i32, %arg0 : i32, i32
  }
  func.func @transform_1(%arg0: i32) -> (i32, i32) {
    %c0_i32 = arith.constant 0 : i32
    %c0_i32_0 = arith.constant 0 : i32
    %c0_i32_1 = arith.constant 0 : i32
    return %c0_i32, %c0_i32_0 : i32, i32
  }
  func.func @transform_2(%arg0: i32) -> (i32, i32) {
    %c0_i32 = arith.constant 0 : i32
    %c0_i32_0 = arith.constant 0 : i32
    return %c0_i32, %arg0 : i32, i32
  }
}

</mosaic_0001>

<bundles_post_ra>
// kernel: _qgan_forward_impl.2
= control target key start
LH: loop header
LB: loop body
LE: loop exit
PB: predicated region body
PF: predicated region fallthrough
CT: control target
= control target key end

     0   :  { %s599_s0 = inlined_call_operand.hbm [shape: f32[16,16], index: 0, kind: input, shape index: {}]   ;;  %s600_s1 = inlined_call_operand.hbm [shape: f32[4,8], index: 1, kind: input, shape index: {}]   ;;  %s601_s2 = inlined_call_operand.<no memory space> [shape: f32[], index: 2, kind: input, shape index: {}]   ;;  %s602_s3 = inlined_call_operand.vmem [shape: f32[1,128], index: 3, kind: output, shape index: {}]  }
   0x1   :  { %v8_v0 = vstv %s601_s2 }
   0x2   :  { %9 = vsyncpa [#allocation8], 0 }
   0x3   :  { %10 = vsyncpa [#allocation10], 0  ;;  %s474_s14 = smov [#allocation7]   ;;  %s475_s16 = smov [#allocation9]  }
   0x4   :  { %s17_s15 = sshll.u32 %s474_s14, 4  ;;  %s26_s17 = sshll.u32 %s475_s16, 4  ;;  %s18_s15 = int_to_ptr.vmem [resolvable:$true] %s17_s15  ;;  %s508_s17 = int_to_ptr.vmem [resolvable:$true] %s26_s17 }
   0x5   :  { %s426_s20 = scalar_lea.hbm %s600_s1, 64 }
   0x6   :  { %p427_p0 = scmp.ne.s32.totalorder %s600_s1, %s426_s20  ;;  %p430_p1 = scmp.lt.u32.totalorder %s426_s20, %s600_s1 }
   0x8   :  { %p432_p2 = pnand %p430_p1, %p427_p0 }
   0xa   :  { %435 = shalt.err (!%p432_p2)
}
   0xb   :  { %s436_s2 = scalar_lea.vmem %s18_s15, 64  ;;  %p441_p4 = scmp.lt.s32.totalorder %s18_s15, %s18_s15 }
   0xc   :  { %p437_p3 = scmp.ne.s32.totalorder %s18_s15, %s436_s2  ;;  %p442_p5 = scmp.lt.s32.totalorder %s436_s2, %s436_s2 }
   0xe   :  { %p443_p6 = por %p442_p5, %p441_p4 }
  0x10   :  { %p444_p7 = pnand %p443_p6, %p437_p3 }
  0x12   :  { %447 = shalt.err (!%p444_p7)
}
  0x13   :  { %20 = dma.hbm_to_vmem [thread:$0]  %s600_s1, 64, %s18_s15, [#allocation8]  }
  0x14   :  { %s448_s29 = scalar_lea.hbm %s599_s0, 256 }
  0x15   :  { %p449_p8 = scmp.ne.s32.totalorder %s599_s0, %s448_s29  ;;  %p452_p9 = scmp.lt.u32.totalorder %s448_s29, %s599_s0 }
  0x17   :  { %p454_p10 = pnand %p452_p9, %p449_p8 }
  0x19   :  { %457 = shalt.err (!%p454_p10)
}
  0x1a   :  { %s458_s7 = scalar_lea.vmem %s508_s17, 256  ;;  %p463_p12 = scmp.lt.s32.totalorder %s508_s17, %s508_s17 }
  0x1b   :  { %p459_p11 = scmp.ne.s32.totalorder %s508_s17, %s458_s7  ;;  %p464_p13 = scmp.lt.s32.totalorder %s458_s7, %s458_s7 }
  0x1d   :  { %p465_p0 = por %p464_p13, %p463_p12 }
  0x1f   :  { %p466_p1 = pnand %p465_p0, %p459_p11 }
  0x21   :  { %469 = shalt.err (!%p466_p1)
}
  0x22   :  { %s476_s1 = smov 128   ;;  %s477_s8 = smov 8  }
  0x23   :  { %32 = dma.hbm_to_vmem [thread:$0]  %s599_s0, 256, %s508_s17, [#allocation10], %s476_s1, %s476_s1, %s477_s8  }
  0x24   :  { %470 = dma.done.wait [#allocation8], 64  }
  0x25   :  { %471 = vsyncadd [#allocation8], 4294967232 }
  0x26   :  { %472 = dma.done.wait [#allocation10], 256  }
  0x27   :  { %473 = vsyncadd [#allocation10], 4294967040  ;;  %v40_v1 = vlaneseq  ;;  %v39_v4 = vld [vmem:[#allocation7] sm:$0xf]  ;;  %v281_v8 = vld [vmem:[#allocation9] sm:$0xff]  ;;  %vm283_vm2 = vcmask 130048  }
  0x28   :  { %400 = vmatprep.mubr.msk.f32.mxu0 %vm283_vm2, %v281_v8  ;;  %v478_v15 = vmov 0.0   ;;  %v479_v45 = vmov 683565275   ;;  %v480_v47 = vmov 2475754826  }
  0x29   :  { %v539_v2 = vshrl.u32 %v40_v1, 7  ;;  %v46_v3 = vand.u32 127, %v40_v1  ;;  %v481_v49 = vmov 2131351028   ;;  %v482_v51 = vmov 2102212464  }
  0x2a   :  { %v483_v53 = vmov 920167782   ;;  %v484_v60 = vmov 1326507024  }
  0x2b   :  { %vm43_vm0 = vcmp.lt.s32.totalorder %v539_v2, 4  ;;  %vm48_vm1 = vcmp.lt.s32.totalorder %v46_v3, 8  ;;  %v56_v7 = vand.u32 3, %v539_v2  ;;  %v62_v9 = vsub.s32 0, %v539_v2 }
  0x2c   :  { %v44_v5 = vsel %vm43_vm0, %v39_v4, %v8_v0  ;;  %v70_v10 = vsub.s32 1, %v539_v2  ;;  %v79_v11 = vsub.s32 2, %v539_v2  ;;  %v88_v12 = vsub.s32 3, %v539_v2 }
  0x2d   :  { %v49_v6 = vsel %vm48_vm1, %v44_v5, %v8_v0  ;;  %vm57_vm3 = vcmp.eq.s32.totalorder %v56_v7, 0  ;;  %vm65_vm4 = vcmp.eq.s32.totalorder %v56_v7, 1  ;;  %vm74_vm5 = vcmp.eq.s32.totalorder %v56_v7, 2 }
  0x2e   :  { %51 = vst [vmem:[#allocation11] sm:$0xf] %v49_v6  ;;  %vm83_vm6 = vcmp.eq.s32.totalorder %v56_v7, 3  ;;  %v381_v16 = vsel %vm57_vm3, 1.0, %v478_v15  ;;  %v382_v17 = vsel %vm65_vm4, 1.0, %v478_v15  ;;  %v383_v18 = vsel %vm74_vm5, 1.0, %v478_v15 }
  0x2f   :  { %vm92_vm7 = vcmp.ge.s32.totalorder %v539_v2, 4  ;;  %v384_v23 = vsel %vm83_vm6, 1.0, %v478_v15 }
  0x30   :  { %v385_v27 = vsel %vm92_vm7, 1.0, %v478_v15 }
  0x31   :  { %v95_v31 = vmul.f32 1.5707964, %v385_v27 }
  0x35   :  { %v52_v13 = vld [vmem:[#allocation11] sm:$0xf] }
  0x36   :  { %v53_v14 = vmul.f32 0.5, %v52_v13 }
  0x38   :  { %v63_v19 = vrot.slane %v53_v14, %v62_v9  ;;  %v71_v20 = vrot.slane %v53_v14, %v70_v10  ;;  %v80_v21 = vrot.slane %v53_v14, %v79_v11  ;;  %v89_v22 = vrot.slane %v53_v14, %v88_v12 }
  0x3a   :  { %v64_v24 = vmul.f32 %v381_v16, %v63_v19  ;;  %v72_v25 = vmul.f32 %v382_v17, %v71_v20  ;;  %v81_v26 = vmul.f32 %v383_v18, %v80_v21  ;;  %v90_v29 = vmul.f32 %v384_v23, %v89_v22 }
  0x3c   :  { %v73_v28 = vadd.f32 %v72_v25, %v64_v24 }
  0x3e   :  { %v82_v30 = vadd.f32 %v81_v26, %v73_v28 }
  0x40   :  { %v91_v32 = vadd.f32 %v90_v29, %v82_v30 }
  0x42   :  { %v557_v33 = vsub.f32 %v91_v32, %v95_v31 }
  0x44   :  { %v100_v34 = vand.u32 2139095040, %v557_v33  ;;  %v97_v36 = vand.u32 2147483647, %v557_v33  ;;  %vm99_vm15 = vcmp.lt.s32.totalorder %v557_v33, 0  ;;  %vm189_vm5 = vweird.f32 %v557_v33 }
  0x46   :  { %v101_v35 = vshrl.u32 %v100_v34, 23  ;;  %v104_v39 = vand.u32 8388607, %v97_v36  ;;  %vm98_vm0 = vcmp.le.f32.partialorder %v97_v36, 0.7853982 }
  0x48   :  { %v386_v37 = vadd.s32 4294967169, %v101_v35  ;;  %v105_v42 = vor.u32 8388608, %v104_v39 }
  0x4a   :  { %v107_v38 = vadd.s32 1, %v386_v37  ;;  %v145_v62 = vshll.u32 %v105_v42, 8 }
  0x4c   :  { %vm108_vm8 = vcmp.gt.s32.totalorder %v107_v38, 0 }
  0x4d   :  { %v109_v40 = vsel %vm108_vm8, %v107_v38, 0 }
  0x4e   :  { %v111_v41 = vand.u32 31, %v109_v40  ;;  %v110_v43 = vshrl.u32 %v109_v40, 5 }
  0x50   :  { %v112_v44 = vsub.s32 32, %v111_v41  ;;  %v114_v46 = vshll.u32 %v479_v45, %v111_v41  ;;  %v117_v48 = vshll.u32 %v480_v47, %v111_v41  ;;  %v120_v50 = vshll.u32 %v481_v49, %v111_v41 }
  0x51   :  { %v123_v52 = vshll.u32 %v482_v51, %v111_v41  ;;  %v126_v54 = vshll.u32 %v483_v53, %v111_v41  ;;  %vm129_vm9 = vcmp.lt.s32.totalorder %v110_v43, 1  ;;  %vm132_vm10 = vcmp.lt.s32.totalorder %v110_v43, 4 }
  0x52   :  { %v113_v55 = vshrl.u32 %v479_v45, %v112_v44  ;;  %v115_v56 = vshrl.u32 %v480_v47, %v112_v44  ;;  %v118_v57 = vshrl.u32 %v481_v49, %v112_v44  ;;  %v121_v58 = vshrl.u32 %v482_v51, %v112_v44 }
  0x53   :  { %v124_v59 = vshrl.u32 %v483_v53, %v112_v44  ;;  %v127_v61 = vshrl.u32 %v484_v60, %v112_v44  ;;  %vm130_vm11 = vcmp.lt.s32.totalorder %v110_v43, 2  ;;  %vm131_vm12 = vcmp.lt.s32.totalorder %v110_v43, 3 }
  0x54   :  { %v116_v63 = vor.u32 %v115_v56, %v114_v46  ;;  %v119_v0 = vor.u32 %v118_v57, %v117_v48  ;;  %v122_v1 = vor.u32 %v121_v58, %v120_v50 }
  0x55   :  { %v125_v3 = vor.u32 %v124_v59, %v123_v52  ;;  %v128_v4 = vor.u32 %v127_v61, %v126_v54  ;;  %v200_v59 = vadd.s32 8, %v539_v2  ;;  %v201_v61 = vshra.s32 %v539_v2, 3 }
  0x56   :  { %v133_v5 = vsel %vm129_vm9, %v113_v55, %v116_v63  ;;  %v134_v6 = vsel %vm132_vm10, %v122_v1, 2102212464  ;;  %v137_v7 = vsel %vm129_vm9, %v116_v63, %v119_v0  ;;  %v141_v8 = vsel %vm129_vm9, %v119_v0, %v122_v1 }
  0x57   :  { %v135_v13 = vsel %vm131_vm12, %v119_v0, %v134_v6  ;;  %v138_v14 = vsel %vm132_vm10, %v125_v3, 920167782  ;;  %v142_v15 = vsel %vm132_vm10, %v128_v4, 1326507024  ;;  %v223_v63 = vshra.s32 %v539_v2, 2 }
  0x58   :  { %v139_v16 = vsel %vm131_vm12, %v122_v1, %v138_v14  ;;  %v143_v17 = vsel %vm131_vm12, %v125_v3, %v142_v15  ;;  %v136_v18 = vsel %vm130_vm11, %v133_v5, %v135_v13  ;;  %v224_v1 = vshra.s32 %v200_v59, 2 }
  0x59   :  { %v140_v19 = vsel %vm130_vm11, %v137_v7, %v139_v16  ;;  %v144_v20 = vsel %vm130_vm11, %v141_v8, %v143_v17  ;;  %v152_v25 = vmul.u32 %v145_v62, %v136_v18  ;;  %v243_v3 = vshra.s32 %v539_v2, 1 }
  0x5a   :  { %v563_v21 = vmul.u32.u64.low %v145_v62, %v144_v20  ;;  %v564_v22 = vmul.u32.u64.high %v145_v62, %v144_v20, %v563_v21  ;;  %v566_v23 = vmul.u32.u64.low %v145_v62, %v140_v19  ;;  %v567_v24 = vmul.u32.u64.high %v145_v62, %v140_v19, %v566_v23 }
  0x5b   :  { %v202_v62 = vshra.s32 %v200_v59, 3  ;;  %v244_v5 = vshra.s32 %v200_v59, 1  ;;  %v203_v8 = vand.u32 1, %v201_v61  ;;  %v225_v14 = vand.u32 1, %v223_v63  ;;  %v282_v63 = vld [vmem:[#allocation9 + $0x8] sm:$0xff] }
  0x5c   :  { %vm154_vm13 = vc.u32 %v564_v22, %v566_v23  ;;  %v155_v26 = vadd.s32 1, %v567_v24  ;;  %v153_v39 = vadd.s32 %v566_v23, %v564_v22  ;;  %v226_v16 = vand.u32 1, %v224_v1 }
  0x5d   :  { %v204_v13 = vand.u32 1, %v202_v62  ;;  %v245_v17 = vand.u32 1, %v243_v3  ;;  %v263_v18 = vand.u32 1, %v539_v2  ;;  %v213_v20 = vsub.s32 4, %v539_v2 }
  0x5e   :  { %v156_v27 = vsel %vm154_vm13, %v155_v26, %v567_v24  ;;  %v246_v21 = vand.u32 1, %v244_v5  ;;  %v264_v22 = vand.u32 1, %v200_v59  ;;  %v231_v24 = vsub.s32 5, %v539_v2 }
  0x5f   :  { %v157_v28 = vadd.s32 %v156_v27, %v152_v25  ;;  %v269_v25 = vsub.s32 7, %v539_v2  ;;  %v205_v26 = vcvt.s32.f32 %v203_v8  ;;  %v206_v27 = vcvt.s32.f32 %v204_v13 }
  0x61   :  { %v158_v29 = vadd.s32 536870912, %v157_v28 }
  0x63   :  { %v159_v30 = vshrl.u32 %v158_v29, 30 }
  0x65   :  { %v160_v31 = vshll.u32 %v159_v30, 30  ;;  %v183_v53 = vsub.s32 4, %v159_v30 }
  0x67   :  { %v161_v32 = vsub.s32 %v157_v28, %v160_v31  ;;  %v184_v56 = vsel %vm99_vm15, %v183_v53, %v159_v30  ;;  %v227_v28 = vcvt.s32.f32 %v225_v14  ;;  %v228_v30 = vcvt.s32.f32 %v226_v16 }
  0x68   :  { %v186_v57 = vsel %vm98_vm0, 0, %v184_v56  ;;  %v247_v31 = vcvt.s32.f32 %v245_v17 }
  0x69   :  { %v163_v34 = vsub.s32 0, %v161_v32  ;;  %v190_v58 = vand.u32 3, %v186_v57 }
  0x6b   :  { %v387_v35 = vmin.u32 %v163_v34, %v161_v32  ;;  %vm195_vm1 = vcmp.eq.s32.totalorder %v190_v58, 2  ;;  %vm192_vm3 = vcmp.eq.s32.totalorder %v190_v58, 0  ;;  %vm191_vm4 = vcmp.lt.s32.totalorder %v190_v58, 2 }
  0x6d   :  { %v165_v37 = vclz %v387_v35 }
  0x6f   :  { %v388_v38 = vadd.s32 4294967294, %v165_v37  ;;  %v248_v37 = vcvt.s32.f32 %v246_v21 }
  0x71   :  { %vm389_vm14 = vcmp.lt.s32.totalorder %v388_v38, 0 }
  0x72   :  { %v168_v40 = vsel %vm389_vm14, 0, %v388_v38  ;;  %v266_v38 = vcvt.s32.f32 %v264_v22 }
  0x73   :  { %v169_v41 = vsub.s32 32, %v168_v40  ;;  %v170_v42 = vshll.u32 %v161_v32, %v168_v40  ;;  %v173_v43 = vsub.s32 4294967266, %v168_v40  ;;  %v265_v32 = vcvt.s32.f32 %v263_v18 }
  0x75   :  { %v171_v44 = vshrl.u32 %v153_v39, %v169_v41  ;;  %v174_v45 = vadd.s32 127, %v173_v43 }
  0x77   :  { %v172_v46 = vor.u32 %v171_v44, %v170_v42  ;;  %v175_v47 = vshll.u32 %v174_v45, 23 }
  0x79   :  { %v176_v48 = vor.u32 4788187, %v175_v47  ;;  %v179_v49 = vcvt.s32.f32 %v172_v46 }
  0x7b   :  { %v177_v50 = vand.u32 2147483647, %v176_v48 }
  0x7d   :  { %v180_v51 = vmul.f32 %v179_v49, %v177_v50 }
  0x7f   :  { %v181_v52 = vxor.u32 2147483648, %v180_v51 }
  0x81   :  { %v182_v54 = vsel %vm99_vm15, %v181_v52, %v180_v51 }
  0x82   :  { %v185_v55 = vsel %vm98_vm0, %v557_v33, %v182_v54  ;;  %v251_v33 = vsub.s32 6, %v539_v2 }
  0x83   :  { %422 = vcosq.f32 %v185_v55 }
  0x84   :  { %424 = vsinq.f32 %v185_v55 }
  0x8d   :  { %v423_v60 = vpop.eup %422 }
  0x8e   :  { %v425_v36 = vpop.eup %424  ;;  %v196_v0 = vxor.u32 2147483648, %v423_v60 }
  0x8f   :  { %v193_v4 = vxor.u32 2147483648, %v425_v36 }
  0x90   :  { %v197_v6 = vsel %vm195_vm1, %v196_v0, %v425_v36 }
  0x91   :  { %v194_v7 = vsel %vm192_vm3, %v423_v60, %v193_v4 }
  0x92   :  { %v198_v15 = vsel %vm191_vm4, %v194_v7, %v197_v6 }
  0x93   :  { %v199_v19 = vsel %vm189_vm5, nan, %v198_v15 }
  0x94   :  { %v208_v23 = vrot.slane %v199_v19, 4  ;;  %v220_v34 = vrot.slane %v199_v19, %v62_v9  ;;  %v238_v35 = vrot.slane %v199_v19, %v70_v10  ;;  %v258_v43 = vrot.slane %v199_v19, %v79_v11 }
  0x95   :  { %v276_v44 = vrot.slane %v199_v19, %v88_v12 }
  0x96   :  { %v210_v29 = vsub.f32 %v199_v19, %v208_v23 }
  0x98   :  { %v214_v39 = vrot.slane %v210_v29, %v213_v20  ;;  %v232_v40 = vrot.slane %v210_v29, %v231_v24  ;;  %v252_v41 = vrot.slane %v210_v29, %v251_v33  ;;  %v270_v42 = vrot.slane %v210_v29, %v269_v25 }
  0x9a   :  { %v215_v45 = vmul.f32 %v214_v39, %v205_v26  ;;  %v216_v46 = vmul.f32 %v214_v39, %v206_v27  ;;  %v233_v47 = vmul.f32 %v232_v40, %v227_v28  ;;  %v234_v48 = vmul.f32 %v232_v40, %v228_v30 }
  0x9b   :  { %v253_v9 = vmul.f32 %v252_v41, %v247_v31  ;;  %v254_v49 = vmul.f32 %v252_v41, %v248_v37  ;;  %v271_v50 = vmul.f32 %v270_v42, %v265_v32  ;;  %v272_v10 = vmul.f32 %v270_v42, %v266_v38 }
  0x9c   :  { %v221_v51 = vadd.f32 %v220_v34, %v215_v45  ;;  %v222_v52 = vadd.f32 %v220_v34, %v216_v46  ;;  %v239_v53 = vadd.f32 %v238_v35, %v233_v47  ;;  %v240_v54 = vadd.f32 %v238_v35, %v234_v48 }
  0x9d   :  { %v259_v55 = vadd.f32 %v258_v43, %v253_v9  ;;  %v260_v56 = vadd.f32 %v258_v43, %v254_v49  ;;  %v277_v57 = vadd.f32 %v276_v44, %v271_v50  ;;  %v278_v58 = vadd.f32 %v276_v44, %v272_v10 }
  0x9e   :  { %v241_v11 = vmul.f32 %v239_v53, %v221_v51  ;;  %v242_v59 = vmul.f32 %v240_v54, %v222_v52 }
  0xa0   :  { %v261_v2 = vmul.f32 %v259_v55, %v241_v11  ;;  %v262_v12 = vmul.f32 %v260_v56, %v242_v59 }
  0xa2   :  { %v279_v60 = vmul.f32 %v277_v57, %v261_v2  ;;  %v280_v61 = vmul.f32 %v278_v58, %v262_v12 }
  0xa4   :  { %v403_v62 = vpack.c.bf16 %v280_v61, %v279_v60 }
  0xa6   :  { %404 = vmatprep.subr.bf16.mxu0 %v403_v62 }
  0xa7   :  { %406 = vmatpush3.bf16.msra.mxu0 %v403_v62 }
  0xaa   :  { %401 = vmatmul.mubr.msk.f32.vlgmr.msra.gmra.mrb[0].mxu0 %vm283_vm2, %v282_v63 }
 0x17d   :  { %v402_v36 = vpop.f32.mrb[0].mxu0 }
 0x17e   :  { %v366_v0 = vmul.f32 %v402_v36, %v280_v61  ;;  %v356_v1 = vpop.f32.mrb[1].mxu0 }
 0x17f   :  { %v365_v3 = vmul.f32 %v356_v1, %v279_v60 }
 0x181   :  { %v367_v4 = vadd.f32 %v366_v0, %v365_v3 }
 0x183   :  { %v368_v5 = vrot.slane %v367_v4, 4 }
 0x185   :  { %v369_v6 = vadd.f32 %v368_v5, %v367_v4 }
 0x187   :  { %v370_v7 = vrot.slane %v369_v6, 2 }
 0x189   :  { %v371_v8 = vadd.f32 %v370_v7, %v369_v6 }
 0x18b   :  { %v372_v13 = vrot.slane %v371_v8, 1 }
 0x18d   :  { %v373_v14 = vadd.f32 %v372_v13, %v371_v8 }
 0x18f   :  { %374 = vst [vmem:[%s602_s3] sm:$0x1] %v373_v14 }
 0x190   :  { %379 = vsyncpa [#allocation8], 1 }
 0x191   :  { %380 = vsyncpa [#allocation10], 1 }

</bundles_post_ra>
